<compile_context>
chip_gen: v6e
topology: v6e:2x2x1
jax: 0.10.0
libtpu: 0.0.40
codegen_flags: <defaults>
</compile_context>

<pallas_src>
import jax
import jax.numpy as jnp
from jax.experimental import pallas as pl
from jax.experimental.pallas import tpu as pltpu

# Tile constants: (TM, C) f32 = 512 KiB per block; double-buffered in + out
# stays ~2 MiB, safe on v5e (16 MiB scoped) / v6e (32 MiB) / v7x (64 MiB phys).
TM = 256
C = 512


def regression2_kernel(params_ref, x_ref, o_ref):
    # params_ref lives in SMEM: [a, c] with a = w1*w2, c = b1*w2 + b2
    a = params_ref[0]
    c = params_ref[1]
    x = x_ref[...]
    o_ref[...] = x * x * a + c


def regression2_forward(x, params):
    """x: (N, 1) f32 (any leading shape works), params: (4,) f32 = [w1, b1, w2, b2]."""
    orig_shape = x.shape
    orig_dtype = x.dtype
    n_elems = x.size

    # Fold the two affine layers at trace time: y = (w1*w2)*x^2 + (b1*w2 + b2).
    w1, b1, w2, b2 = params[0], params[1], params[2], params[3]
    folded = jnp.stack([w1 * w2, b1 * w2 + b2]).astype(jnp.float32)

    # Lane-dense layout: flatten, pad to a whole number of (TM, C) tiles,
    # reshape to (rows, C) so the last dim is a large multiple of 128.
    block_elems = TM * C
    n_blocks = max(1, pl.cdiv(n_elems, block_elems))
    padded = n_blocks * block_elems
    flat = jnp.ravel(x).astype(jnp.float32)
    flat = jnp.pad(flat, (0, padded - n_elems))
    rows = padded // C
    x2d = flat.reshape(rows, C)

    out2d = pl.pallas_call(
        regression2_kernel,
        out_shape=jax.ShapeDtypeStruct((rows, C), jnp.float32),
        grid=(rows // TM,),
        in_specs=[
            pl.BlockSpec(memory_space=pltpu.MemorySpace.SMEM),  # folded scalars
            pl.BlockSpec((TM, C), lambda i: (i, 0)),            # lane-dense x tile
        ],
        out_specs=pl.BlockSpec((TM, C), lambda i: (i, 0)),
        compiler_params=pltpu.CompilerParams(
            dimension_semantics=("parallel",),   # megacore sharding on v7x
            vmem_limit_bytes=16 * 1024 * 1024,   # plenty for 2 MiB working set
        ),
    )(folded, x2d)

    # Undo padding / reshape.
    return out2d.ravel()[:n_elems].reshape(orig_shape).astype(orig_dtype)


if __name__ == "__main__":
    key = jax.random.PRNGKey(0)

    # Deterministic parameter init (Linear(1,1) weights/biases are scalars).
    kw1, kb1, kw2, kb2, kx = jax.random.split(key, 5)
    w1 = jax.random.uniform(kw1, (), minval=-1.0, maxval=1.0)
    b1 = jax.random.uniform(kb1, (), minval=-1.0, maxval=1.0)
    w2 = jax.random.uniform(kw2, (), minval=-1.0, maxval=1.0)
    b2 = jax.random.uniform(kb2, (), minval=-1.0, maxval=1.0)
    params = jnp.stack([w1, b1, w2, b2]).astype(jnp.float32)

    # Small input consistent with the module: (batch=8, in_features=1)
    x = jax.random.normal(kx, (8, 1), dtype=jnp.float32)

    out = regression2_forward(x, params)
    out = jax.block_until_ready(out)

    # Pure-JAX reference for correctness.
    ref = (x * x * w1 + b1) * w2 + b2
    assert out.shape == (8, 1)
    assert jnp.allclose(out, ref, atol=1e-6, rtol=1e-6)

    print("KERNEL_OK")
</pallas_src>

<mosaic_0001>
module attributes {stable_mosaic.version = 11 : i64} {
  func.func @regression2_kernel(%arg0: i32, %arg1: memref<2xf32, #tpu.memory_space<smem>>, %arg2: memref<256x512xf32, #tpu.memory_space<vmem>>, %arg3: memref<256x512xf32, #tpu.memory_space<vmem>>) attributes {dimension_semantics = [#tpu.dimension_semantics<parallel>], iteration_bounds = array<i64: 1>, scalar_prefetch = 0 : i64, scratch_operands = 0 : i64, tpu.core_type = #tpu.core_type<tc>, window_params = [{transform_indices = @transform_0, window_bounds = array<i64: 2>}, {transform_indices = @transform_1, window_bounds = array<i64: 256, 512>}, {transform_indices = @transform_2, window_bounds = array<i64: 256, 512>}]} {
    %c0 = arith.constant 0 : index
    %0 = memref.load %arg1[%c0] : memref<2xf32, #tpu.memory_space<smem>>
    %c1 = arith.constant 1 : index
    %1 = memref.load %arg1[%c1] : memref<2xf32, #tpu.memory_space<smem>>
    %c0_0 = arith.constant 0 : index
    %c0_1 = arith.constant 0 : index
    %2 = vector.load %arg2[%c0_0, %c0_1] : memref<256x512xf32, #tpu.memory_space<vmem>>, vector<256x512xf32>
    %3 = arith.mulf %2, %2 : vector<256x512xf32>
    %4 = vector.broadcast %0 : f32 to vector<256x512xf32>
    %5 = arith.mulf %3, %4 : vector<256x512xf32>
    %6 = vector.broadcast %1 : f32 to vector<256x512xf32>
    %7 = arith.addf %5, %6 : vector<256x512xf32>
    %c0_2 = arith.constant 0 : index
    %c0_3 = arith.constant 0 : index
    %8 = vector.load %arg3[%c0_2, %c0_3] : memref<256x512xf32, #tpu.memory_space<vmem>>, vector<256x512xf32>
    tpu.vector_store %arg3[%c0_2, %c0_3], %7 {strides = array<i32>} : memref<256x512xf32, #tpu.memory_space<vmem>>, vector<256x512xf32>,
    return
  }
  func.func @transform_0(%arg0: i32) -> i32 {
    %c0_i32 = arith.constant 0 : i32
    %c0_i32_0 = arith.constant 0 : i32
    return %c0_i32 : i32
  }
  func.func @transform_1(%arg0: i32) -> (i32, i32) {
    %c0_i32 = arith.constant 0 : i32
    %c0_i32_0 = arith.constant 0 : i32
    return %arg0, %c0_i32 : i32, i32
  }
  func.func @transform_2(%arg0: i32) -> (i32, i32) {
    %c0_i32 = arith.constant 0 : i32
    %c0_i32_0 = arith.constant 0 : i32
    return %arg0, %c0_i32 : i32, i32
  }
}

</mosaic_0001>

<bundles_post_ra>
// kernel: tpu_custom_call.1
= control target key start
LH: loop header
LB: loop body
LE: loop exit
PB: predicated region body
PF: predicated region fallthrough
CT: control target
= control target key end

     0   :  { %7 = vsyncpa [#allocation5], 0  ;;  %s1060_s0 = inlined_call_operand.hbm [shape: f32[2], index: 0, kind: input, shape index: {}]   ;;  %s1061_s1 = inlined_call_operand.hbm [shape: f32[256,512], index: 1, kind: input, shape index: {}]   ;;  %s1062_s2 = inlined_call_operand.hbm [shape: f32[256,512], index: 2, kind: output, shape index: {}]  }
   0x1   :  { %8 = vsyncpa [#allocation3], 0 }
   0x2   :  { %9 = vsyncpa [#allocation4], 0  ;;  %s759_s9 = smov [#allocation2]   ;;  %s760_s12 = smov [#allocation6]  }
   0x3   :  { %17 = dma.hbm_to_smem %s1060_s0, 16, %s759_s9, [#allocation5]  }
   0x4   :  { %s23_s13 = sshll.u32 %s760_s12, 4  ;;  %s24_s13 = int_to_ptr.vmem [resolvable:$true] %s23_s13 }
   0x5   :  { %s721_s14 = scalar_lea.vmem %s24_s13, 16384  ;;  %p726_p1 = scmp.lt.s32.totalorder %s24_s13, %s24_s13 }
   0x6   :  { %p722_p0 = scmp.ne.s32.totalorder %s24_s13, %s721_s14  ;;  %p727_p2 = scmp.lt.s32.totalorder %s721_s14, %s721_s14 }
   0x8   :  { %p728_p3 = por %p727_p2, %p726_p1 }
   0xa   :  { %p729_p4 = pnand %p728_p3, %p722_p0 }
   0xc   :  { %732 = shalt.err (!%p729_p4)
}
   0xd   :  { %s761_s15 = smov 512   ;;  %s762_s16 = smov 32  }
   0xe   :  { %29 = dma.hbm_to_vmem [thread:$0]  %s1061_s1, 16384, %s24_s13, [#allocation3], %s761_s15, %s761_s15, %s762_s16  }
   0xf   :  { %753 = dma.done.wait [#allocation5], 16  }
  0x10   :  { %754 = vsyncadd [#allocation5], 4294967280 }
  0x11   :  { %755 = dma.done.wait [#allocation3], 16384  }
  0x12   :  { %756 = vsyncadd [#allocation3], 4294950912 }
  0x13   :  { %36 = sfence }
  0x14   :  { %s788_s0 = sld [smem:[#allocation2]]  ;;  %v39_v0 = vld [vmem:[#allocation6] sm:$0xff]  ;;  %v40_v1 = vld [vmem:[#allocation6 + $0x8] sm:$0xff]  ;;  %v41_v2 = vld [vmem:[#allocation6 + $0x10] sm:$0xff]  ;;  %s763_s1 = smov [#allocation7]  }
  0x15   :  { %s790_s19 = sld [smem:[#allocation2 + $0x1]]  ;;  %v42_v3 = vld [vmem:[#allocation6 + $0x18] sm:$0xff]  ;;  %v43_v4 = vld [vmem:[#allocation6 + $0x20] sm:$0xff]  ;;  %v44_v5 = vld [vmem:[#allocation6 + $0x28] sm:$0xff]  ;;  %v167_v6 = vmul.f32 %v39_v0, %v39_v0  ;;  %v168_v7 = vmul.f32 %v40_v1, %v40_v1  ;;  %v169_v8 = vmul.f32 %v41_v2, %v41_v2  ;;  %s686_s20 = sshll.u32 %s763_s1, 4  ;;  %s687_s20 = int_to_ptr.vmem [resolvable:$true] %s686_s20 }
  0x16   :  { %v45_v9 = vld [vmem:[#allocation6 + $0x30] sm:$0xff]  ;;  %v46_v10 = vld [vmem:[#allocation6 + $0x38] sm:$0xff]  ;;  %v47_v11 = vld [vmem:[#allocation6 + $0x40] sm:$0xff]  ;;  %v170_v12 = vmul.f32 %v42_v3, %v42_v3  ;;  %v171_v13 = vmul.f32 %v43_v4, %v43_v4  ;;  %v172_v14 = vmul.f32 %v44_v5, %v44_v5  ;;  %s733_s21 = scalar_lea.vmem %s687_s20, 16384  ;;  %p738_p6 = scmp.lt.s32.totalorder %s687_s20, %s687_s20 }
  0x17   :  { %v173_v15 = vmul.f32 %v45_v9, %v45_v9  ;;  %v48_v16 = vld [vmem:[#allocation6 + $0x48] sm:$0xff]  ;;  %v49_v17 = vld [vmem:[#allocation6 + $0x50] sm:$0xff]  ;;  %v50_v18 = vld [vmem:[#allocation6 + $0x58] sm:$0xff]  ;;  %v174_v19 = vmul.f32 %v46_v10, %v46_v10  ;;  %v175_v20 = vmul.f32 %v47_v11, %v47_v11  ;;  %p734_p5 = scmp.ne.s32.totalorder %s687_s20, %s733_s21  ;;  %p739_p7 = scmp.lt.s32.totalorder %s733_s21, %s733_s21 }
  0x18   :  { %v176_v21 = vmul.f32 %v48_v16, %v48_v16  ;;  %v177_v22 = vmul.f32 %v49_v17, %v49_v17  ;;  %v51_v23 = vld [vmem:[#allocation6 + $0x60] sm:$0xff]  ;;  %v52_v24 = vld [vmem:[#allocation6 + $0x68] sm:$0xff]  ;;  %v53_v25 = vld [vmem:[#allocation6 + $0x70] sm:$0xff]  ;;  %v178_v26 = vmul.f32 %v50_v18, %v50_v18 }
  0x19   :  { %v179_v27 = vmul.f32 %v51_v23, %v51_v23  ;;  %v180_v28 = vmul.f32 %v52_v24, %v52_v24  ;;  %v181_v29 = vmul.f32 %v53_v25, %v53_v25  ;;  %v54_v30 = vld [vmem:[#allocation6 + $0x78] sm:$0xff]  ;;  %v55_v31 = vld [vmem:[#allocation6 + $0x80] sm:$0xff]  ;;  %v56_v32 = vld [vmem:[#allocation6 + $0x88] sm:$0xff]  ;;  %p740_p8 = por %p739_p7, %p738_p6 }
  0x1a   :  { %v793_v33 = vstv %s788_s0  ;;  %v182_v34 = vmul.f32 %v54_v30, %v54_v30  ;;  %v183_v35 = vmul.f32 %v55_v31, %v55_v31  ;;  %v184_v36 = vmul.f32 %v56_v32, %v56_v32  ;;  %v57_v61 = vld [vmem:[#allocation6 + $0x90] sm:$0xff]  ;;  %v58_v62 = vld [vmem:[#allocation6 + $0x98] sm:$0xff]  ;;  %v59_v3 = vld [vmem:[#allocation6 + $0xa0] sm:$0xff] }
  0x1b   :  { %v296_v37 = vmul.f32 %v793_v33, %v167_v6  ;;  %v797_v38 = vstv %s790_s19  ;;  %v297_v39 = vmul.f32 %v793_v33, %v168_v7  ;;  %v298_v40 = vmul.f32 %v793_v33, %v169_v8  ;;  %v60_v4 = vld [vmem:[#allocation6 + $0xa8] sm:$0xff]  ;;  %v61_v5 = vld [vmem:[#allocation6 + $0xb0] sm:$0xff]  ;;  %v62_v10 = vld [vmem:[#allocation6 + $0xb8] sm:$0xff]  ;;  %p741_p9 = pnand %p740_p8, %p734_p5 }
  0x1c   :  { %v299_v41 = vmul.f32 %v793_v33, %v170_v12  ;;  %v300_v42 = vmul.f32 %v793_v33, %v171_v13  ;;  %v301_v43 = vmul.f32 %v793_v33, %v172_v14  ;;  %v302_v44 = vmul.f32 %v793_v33, %v173_v15  ;;  %v66_v30 = vld [vmem:[#allocation6 + $0xd8] sm:$0xff] }
  0x1d   :  { %v425_v45 = vadd.f32 %v797_v38, %v296_v37  ;;  %v426_v46 = vadd.f32 %v797_v38, %v297_v39  ;;  %v427_v47 = vadd.f32 %v797_v38, %v298_v40  ;;  %v303_v48 = vmul.f32 %v793_v33, %v174_v19  ;;  %v63_v19 = vld [vmem:[#allocation6 + $0xc0] sm:$0xff]  ;;  %v68_v37 = vld [vmem:[#allocation6 + $0xe8] sm:$0xff]  ;;  %v69_v39 = vld [vmem:[#allocation6 + $0xf0] sm:$0xff] }
  0x1e   :  { %v428_v49 = vadd.f32 %v797_v38, %v299_v41  ;;  %v429_v50 = vadd.f32 %v797_v38, %v300_v42  ;;  %v430_v51 = vadd.f32 %v797_v38, %v301_v43  ;;  %v431_v52 = vadd.f32 %v797_v38, %v302_v44  ;;  %v70_v44 = vld [vmem:[#allocation6 + $0xf8] sm:$0xff] }
  0x1f   :  { %553 = vst [vmem:[#allocation7] sm:$0xff] %v425_v45  ;;  %554 = vst [vmem:[#allocation7 + $0x8] sm:$0xff] %v426_v46  ;;  %v432_v53 = vadd.f32 %v797_v38, %v303_v48  ;;  %v304_v54 = vmul.f32 %v793_v33, %v175_v20  ;;  %v305_v55 = vmul.f32 %v793_v33, %v176_v21  ;;  %v64_v20 = vld [vmem:[#allocation6 + $0xc8] sm:$0xff] }
  0x20   :  { %555 = vst [vmem:[#allocation7 + $0x10] sm:$0xff] %v427_v47  ;;  %v306_v56 = vmul.f32 %v793_v33, %v177_v22  ;;  %556 = vst [vmem:[#allocation7 + $0x18] sm:$0xff] %v428_v49  ;;  %v307_v57 = vmul.f32 %v793_v33, %v178_v26  ;;  %v308_v58 = vmul.f32 %v793_v33, %v179_v27 }
  0x21   :  { %557 = vst [vmem:[#allocation7 + $0x20] sm:$0xff] %v429_v50  ;;  %558 = vst [vmem:[#allocation7 + $0x28] sm:$0xff] %v430_v51  ;;  %v309_v59 = vmul.f32 %v793_v33, %v180_v28  ;;  %v310_v60 = vmul.f32 %v793_v33, %v181_v29  ;;  %v433_v63 = vadd.f32 %v797_v38, %v304_v54  ;;  %v65_v29 = vld [vmem:[#allocation6 + $0xd0] sm:$0xff]  ;;  %v72_v54 = vld [vmem:[#allocation6 + $0x108] sm:$0xff] }
  0x22   :  { %559 = vst [vmem:[#allocation7 + $0x30] sm:$0xff] %v431_v52  ;;  %560 = vst [vmem:[#allocation7 + $0x38] sm:$0xff] %v432_v53  ;;  %v434_v0 = vadd.f32 %v797_v38, %v305_v55  ;;  %v435_v1 = vadd.f32 %v797_v38, %v306_v56  ;;  %v311_v2 = vmul.f32 %v793_v33, %v182_v34  ;;  %v71_v53 = vld [vmem:[#allocation6 + $0x100] sm:$0xff] }
  0x23   :  { %v436_v6 = vadd.f32 %v797_v38, %v307_v57  ;;  %v437_v7 = vadd.f32 %v797_v38, %v308_v58  ;;  %v438_v8 = vadd.f32 %v797_v38, %v309_v59  ;;  %v439_v9 = vadd.f32 %v797_v38, %v310_v60  ;;  %561 = vst [vmem:[#allocation7 + $0x40] sm:$0xff] %v433_v63  ;;  %v73_v63 = vld [vmem:[#allocation6 + $0x110] sm:$0xff] }
  0x24   :  { %562 = vst [vmem:[#allocation7 + $0x48] sm:$0xff] %v434_v0  ;;  %563 = vst [vmem:[#allocation7 + $0x50] sm:$0xff] %v435_v1  ;;  %v440_v11 = vadd.f32 %v797_v38, %v311_v2  ;;  %v312_v12 = vmul.f32 %v793_v33, %v183_v35  ;;  %v313_v13 = vmul.f32 %v793_v33, %v184_v36  ;;  %v67_v36 = vld [vmem:[#allocation6 + $0xe0] sm:$0xff]  ;;  %v74_v0 = vld [vmem:[#allocation6 + $0x118] sm:$0xff] }
  0x25   :  { %v185_v14 = vmul.f32 %v57_v61, %v57_v61  ;;  %564 = vst [vmem:[#allocation7 + $0x58] sm:$0xff] %v436_v6  ;;  %565 = vst [vmem:[#allocation7 + $0x60] sm:$0xff] %v437_v7  ;;  %v186_v15 = vmul.f32 %v58_v62, %v58_v62  ;;  %v187_v16 = vmul.f32 %v59_v3, %v59_v3  ;;  %v76_v6 = vld [vmem:[#allocation6 + $0x128] sm:$0xff]  ;;  %v77_v7 = vld [vmem:[#allocation6 + $0x130] sm:$0xff] }
  0x26   :  { %566 = vst [vmem:[#allocation7 + $0x68] sm:$0xff] %v438_v8  ;;  %567 = vst [vmem:[#allocation7 + $0x70] sm:$0xff] %v439_v9  ;;  %v188_v17 = vmul.f32 %v60_v4, %v60_v4  ;;  %v189_v18 = vmul.f32 %v61_v5, %v61_v5  ;;  %v441_v21 = vadd.f32 %v797_v38, %v312_v12  ;;  %v75_v5 = vld [vmem:[#allocation6 + $0x120] sm:$0xff]  ;;  %v78_v12 = vld [vmem:[#allocation6 + $0x138] sm:$0xff] }
  0x27   :  { %568 = vst [vmem:[#allocation7 + $0x78] sm:$0xff] %v440_v11  ;;  %v442_v22 = vadd.f32 %v797_v38, %v313_v13  ;;  %v314_v23 = vmul.f32 %v793_v33, %v185_v14  ;;  %v190_v24 = vmul.f32 %v62_v10, %v62_v10  ;;  %v315_v25 = vmul.f32 %v793_v33, %v186_v15 }
  0x28   :  { %v316_v26 = vmul.f32 %v793_v33, %v187_v16  ;;  %v317_v27 = vmul.f32 %v793_v33, %v188_v17  ;;  %v318_v28 = vmul.f32 %v793_v33, %v189_v18  ;;  %569 = vst [vmem:[#allocation7 + $0x80] sm:$0xff] %v441_v21  ;;  %v191_v34 = vmul.f32 %v63_v19, %v63_v19  ;;  %v79_v21 = vld [vmem:[#allocation6 + $0x140] sm:$0xff] }
  0x29   :  { %570 = vst [vmem:[#allocation7 + $0x88] sm:$0xff] %v442_v22  ;;  %v443_v31 = vadd.f32 %v797_v38, %v314_v23  ;;  %v319_v32 = vmul.f32 %v793_v33, %v190_v24  ;;  %v192_v35 = vmul.f32 %v64_v20, %v64_v20  ;;  %v444_v40 = vadd.f32 %v797_v38, %v315_v25  ;;  %v80_v22 = vld [vmem:[#allocation6 + $0x148] sm:$0xff] }
  0x2a   :  { %v445_v41 = vadd.f32 %v797_v38, %v316_v26  ;;  %v446_v42 = vadd.f32 %v797_v38, %v317_v27  ;;  %v447_v43 = vadd.f32 %v797_v38, %v318_v28  ;;  %v320_v46 = vmul.f32 %v793_v33, %v191_v34 }
  0x2b   :  { %571 = vst [vmem:[#allocation7 + $0x90] sm:$0xff] %v443_v31  ;;  %v448_v45 = vadd.f32 %v797_v38, %v319_v32  ;;  %v321_v47 = vmul.f32 %v793_v33, %v192_v35  ;;  %v193_v48 = vmul.f32 %v65_v29, %v65_v29  ;;  %572 = vst [vmem:[#allocation7 + $0x98] sm:$0xff] %v444_v40  ;;  %v81_v31 = vld [vmem:[#allocation6 + $0x150] sm:$0xff]  ;;  %v82_v32 = vld [vmem:[#allocation6 + $0x158] sm:$0xff] }
  0x2c   :  { %573 = vst [vmem:[#allocation7 + $0xa0] sm:$0xff] %v445_v41  ;;  %574 = vst [vmem:[#allocation7 + $0xa8] sm:$0xff] %v446_v42  ;;  %v194_v49 = vmul.f32 %v66_v30, %v66_v30  ;;  %v195_v50 = vmul.f32 %v67_v36, %v67_v36  ;;  %v196_v51 = vmul.f32 %v68_v37, %v68_v37  ;;  %v84_v40 = vld [vmem:[#allocation6 + $0x168] sm:$0xff]  ;;  %v85_v41 = vld [vmem:[#allocation6 + $0x170] sm:$0xff] }
  0x2d   :  { %575 = vst [vmem:[#allocation7 + $0xb0] sm:$0xff] %v447_v43  ;;  %v197_v52 = vmul.f32 %v69_v39, %v69_v39  ;;  %576 = vst [vmem:[#allocation7 + $0xb8] sm:$0xff] %v448_v45  ;;  %v449_v55 = vadd.f32 %v797_v38, %v320_v46  ;;  %v450_v56 = vadd.f32 %v797_v38, %v321_v47  ;;  %v83_v39 = vld [vmem:[#allocation6 + $0x160] sm:$0xff]  ;;  %v86_v46 = vld [vmem:[#allocation6 + $0x178] sm:$0xff] }
  0x2e   :  { %v322_v57 = vmul.f32 %v793_v33, %v193_v48  ;;  %v198_v58 = vmul.f32 %v70_v44, %v70_v44  ;;  %v323_v59 = vmul.f32 %v793_v33, %v194_v49  ;;  %v324_v60 = vmul.f32 %v793_v33, %v195_v50 }
  0x2f   :  { %v325_v61 = vmul.f32 %v793_v33, %v196_v51  ;;  %v326_v62 = vmul.f32 %v793_v33, %v197_v52  ;;  %577 = vst [vmem:[#allocation7 + $0xc0] sm:$0xff] %v449_v55  ;;  %578 = vst [vmem:[#allocation7 + $0xc8] sm:$0xff] %v450_v56  ;;  %v199_v3 = vmul.f32 %v71_v53, %v71_v53  ;;  %v87_v55 = vld [vmem:[#allocation6 + $0x180] sm:$0xff]  ;;  %v88_v56 = vld [vmem:[#allocation6 + $0x188] sm:$0xff] }
  0x30   :  { %v451_v1 = vadd.f32 %v797_v38, %v322_v57  ;;  %v327_v2 = vmul.f32 %v793_v33, %v198_v58  ;;  %v200_v4 = vmul.f32 %v72_v54, %v72_v54  ;;  %v452_v8 = vadd.f32 %v797_v38, %v323_v59 }
  0x31   :  { %v453_v9 = vadd.f32 %v797_v38, %v324_v60  ;;  %v454_v10 = vadd.f32 %v797_v38, %v325_v61  ;;  %v455_v11 = vadd.f32 %v797_v38, %v326_v62  ;;  %v328_v14 = vmul.f32 %v793_v33, %v199_v3 }
  0x32   :  { %579 = vst [vmem:[#allocation7 + $0xd0] sm:$0xff] %v451_v1  ;;  %v456_v13 = vadd.f32 %v797_v38, %v327_v2  ;;  %v329_v15 = vmul.f32 %v793_v33, %v200_v4  ;;  %v201_v16 = vmul.f32 %v73_v63, %v73_v63  ;;  %580 = vst [vmem:[#allocation7 + $0xd8] sm:$0xff] %v452_v8  ;;  %v89_v1 = vld [vmem:[#allocation6 + $0x190] sm:$0xff]  ;;  %v90_v2 = vld [vmem:[#allocation6 + $0x198] sm:$0xff] }
  0x33   :  { %581 = vst [vmem:[#allocation7 + $0xe0] sm:$0xff] %v453_v9  ;;  %582 = vst [vmem:[#allocation7 + $0xe8] sm:$0xff] %v454_v10  ;;  %v202_v17 = vmul.f32 %v74_v0, %v74_v0  ;;  %v203_v18 = vmul.f32 %v75_v5, %v75_v5  ;;  %v204_v19 = vmul.f32 %v76_v6, %v76_v6  ;;  %v92_v8 = vld [vmem:[#allocation6 + $0x1a8] sm:$0xff]  ;;  %v93_v9 = vld [vmem:[#allocation6 + $0x1b0] sm:$0xff] }
  0x34   :  { %583 = vst [vmem:[#allocation7 + $0xf0] sm:$0xff] %v455_v11  ;;  %v205_v20 = vmul.f32 %v77_v7, %v77_v7  ;;  %584 = vst [vmem:[#allocation7 + $0xf8] sm:$0xff] %v456_v13  ;;  %v457_v23 = vadd.f32 %v797_v38, %v328_v14  ;;  %v458_v24 = vadd.f32 %v797_v38, %v329_v15  ;;  %v91_v7 = vld [vmem:[#allocation6 + $0x1a0] sm:$0xff]  ;;  %v94_v14 = vld [vmem:[#allocation6 + $0x1b8] sm:$0xff] }
  0x35   :  { %v330_v25 = vmul.f32 %v793_v33, %v201_v16  ;;  %v206_v26 = vmul.f32 %v78_v12, %v78_v12  ;;  %v331_v27 = vmul.f32 %v793_v33, %v202_v17  ;;  %v332_v28 = vmul.f32 %v793_v33, %v203_v18 }
  0x36   :  { %v333_v29 = vmul.f32 %v793_v33, %v204_v19  ;;  %v334_v30 = vmul.f32 %v793_v33, %v205_v20  ;;  %585 = vst [vmem:[#allocation7 + $0x100] sm:$0xff] %v457_v23  ;;  %586 = vst [vmem:[#allocation7 + $0x108] sm:$0xff] %v458_v24  ;;  %v207_v36 = vmul.f32 %v79_v21, %v79_v21  ;;  %v95_v23 = vld [vmem:[#allocation6 + $0x1c0] sm:$0xff]  ;;  %v96_v24 = vld [vmem:[#allocation6 + $0x1c8] sm:$0xff] }
  0x37   :  { %v459_v34 = vadd.f32 %v797_v38, %v330_v25  ;;  %v335_v35 = vmul.f32 %v793_v33, %v206_v26  ;;  %v208_v37 = vmul.f32 %v80_v22, %v80_v22  ;;  %v460_v42 = vadd.f32 %v797_v38, %v331_v27 }
  0x38   :  { %v461_v43 = vadd.f32 %v797_v38, %v332_v28  ;;  %v462_v44 = vadd.f32 %v797_v38, %v333_v29  ;;  %v463_v45 = vadd.f32 %v797_v38, %v334_v30  ;;  %v336_v48 = vmul.f32 %v793_v33, %v207_v36 }
  0x39   :  { %587 = vst [vmem:[#allocation7 + $0x110] sm:$0xff] %v459_v34  ;;  %v464_v47 = vadd.f32 %v797_v38, %v335_v35  ;;  %v337_v49 = vmul.f32 %v793_v33, %v208_v37  ;;  %v209_v50 = vmul.f32 %v81_v31, %v81_v31  ;;  %588 = vst [vmem:[#allocation7 + $0x118] sm:$0xff] %v460_v42  ;;  %v97_v34 = vld [vmem:[#allocation6 + $0x1d0] sm:$0xff]  ;;  %v98_v35 = vld [vmem:[#allocation6 + $0x1d8] sm:$0xff] }
  0x3a   :  { %589 = vst [vmem:[#allocation7 + $0x120] sm:$0xff] %v461_v43  ;;  %590 = vst [vmem:[#allocation7 + $0x128] sm:$0xff] %v462_v44  ;;  %v210_v51 = vmul.f32 %v82_v32, %v82_v32  ;;  %v211_v52 = vmul.f32 %v83_v39, %v83_v39  ;;  %v212_v53 = vmul.f32 %v84_v40, %v84_v40  ;;  %v100_v42 = vld [vmem:[#allocation6 + $0x1e8] sm:$0xff]  ;;  %v101_v43 = vld [vmem:[#allocation6 + $0x1f0] sm:$0xff] }
  0x3b   :  { %591 = vst [vmem:[#allocation7 + $0x130] sm:$0xff] %v463_v45  ;;  %v213_v54 = vmul.f32 %v85_v41, %v85_v41  ;;  %592 = vst [vmem:[#allocation7 + $0x138] sm:$0xff] %v464_v47  ;;  %v465_v57 = vadd.f32 %v797_v38, %v336_v48  ;;  %v466_v58 = vadd.f32 %v797_v38, %v337_v49  ;;  %v99_v41 = vld [vmem:[#allocation6 + $0x1e0] sm:$0xff]  ;;  %v102_v48 = vld [vmem:[#allocation6 + $0x1f8] sm:$0xff] }
  0x3c   :  { %v338_v59 = vmul.f32 %v793_v33, %v209_v50  ;;  %v214_v60 = vmul.f32 %v86_v46, %v86_v46  ;;  %v339_v61 = vmul.f32 %v793_v33, %v210_v51  ;;  %v340_v62 = vmul.f32 %v793_v33, %v211_v52 }
  0x3d   :  { %v341_v63 = vmul.f32 %v793_v33, %v212_v53  ;;  %v342_v0 = vmul.f32 %v793_v33, %v213_v54  ;;  %593 = vst [vmem:[#allocation7 + $0x140] sm:$0xff] %v465_v57  ;;  %594 = vst [vmem:[#allocation7 + $0x148] sm:$0xff] %v466_v58  ;;  %v215_v5 = vmul.f32 %v87_v55, %v87_v55  ;;  %v103_v57 = vld [vmem:[#allocation6 + $0x200] sm:$0xff]  ;;  %v104_v58 = vld [vmem:[#allocation6 + $0x208] sm:$0xff] }
  0x3e   :  { %v467_v3 = vadd.f32 %v797_v38, %v338_v59  ;;  %v343_v4 = vmul.f32 %v793_v33, %v214_v60  ;;  %v216_v6 = vmul.f32 %v88_v56, %v88_v56  ;;  %v468_v10 = vadd.f32 %v797_v38, %v339_v61 }
  0x3f   :  { %v469_v11 = vadd.f32 %v797_v38, %v340_v62  ;;  %v470_v12 = vadd.f32 %v797_v38, %v341_v63  ;;  %v471_v13 = vadd.f32 %v797_v38, %v342_v0  ;;  %v344_v16 = vmul.f32 %v793_v33, %v215_v5 }
  0x40   :  { %595 = vst [vmem:[#allocation7 + $0x150] sm:$0xff] %v467_v3  ;;  %v472_v15 = vadd.f32 %v797_v38, %v343_v4  ;;  %v345_v17 = vmul.f32 %v793_v33, %v216_v6  ;;  %v217_v18 = vmul.f32 %v89_v1, %v89_v1  ;;  %596 = vst [vmem:[#allocation7 + $0x158] sm:$0xff] %v468_v10  ;;  %v105_v3 = vld [vmem:[#allocation6 + $0x210] sm:$0xff]  ;;  %v106_v4 = vld [vmem:[#allocation6 + $0x218] sm:$0xff] }
  0x41   :  { %597 = vst [vmem:[#allocation7 + $0x160] sm:$0xff] %v469_v11  ;;  %598 = vst [vmem:[#allocation7 + $0x168] sm:$0xff] %v470_v12  ;;  %v218_v19 = vmul.f32 %v90_v2, %v90_v2  ;;  %v219_v20 = vmul.f32 %v91_v7, %v91_v7  ;;  %v220_v21 = vmul.f32 %v92_v8, %v92_v8  ;;  %v108_v10 = vld [vmem:[#allocation6 + $0x228] sm:$0xff]  ;;  %v109_v11 = vld [vmem:[#allocation6 + $0x230] sm:$0xff] }
  0x42   :  { %599 = vst [vmem:[#allocation7 + $0x170] sm:$0xff] %v471_v13  ;;  %v221_v22 = vmul.f32 %v93_v9, %v93_v9  ;;  %600 = vst [vmem:[#allocation7 + $0x178] sm:$0xff] %v472_v15  ;;  %v473_v25 = vadd.f32 %v797_v38, %v344_v16  ;;  %v474_v26 = vadd.f32 %v797_v38, %v345_v17  ;;  %v107_v9 = vld [vmem:[#allocation6 + $0x220] sm:$0xff]  ;;  %v110_v16 = vld [vmem:[#allocation6 + $0x238] sm:$0xff] }
  0x43   :  { %v346_v27 = vmul.f32 %v793_v33, %v217_v18  ;;  %v222_v28 = vmul.f32 %v94_v14, %v94_v14  ;;  %v347_v29 = vmul.f32 %v793_v33, %v218_v19  ;;  %v348_v30 = vmul.f32 %v793_v33, %v219_v20 }
  0x44   :  { %v349_v31 = vmul.f32 %v793_v33, %v220_v21  ;;  %v350_v32 = vmul.f32 %v793_v33, %v221_v22  ;;  %601 = vst [vmem:[#allocation7 + $0x180] sm:$0xff] %v473_v25  ;;  %602 = vst [vmem:[#allocation7 + $0x188] sm:$0xff] %v474_v26  ;;  %v223_v39 = vmul.f32 %v95_v23, %v95_v23  ;;  %v111_v25 = vld [vmem:[#allocation6 + $0x240] sm:$0xff]  ;;  %v112_v26 = vld [vmem:[#allocation6 + $0x248] sm:$0xff] }
  0x45   :  { %v475_v36 = vadd.f32 %v797_v38, %v346_v27  ;;  %v351_v37 = vmul.f32 %v793_v33, %v222_v28  ;;  %v224_v40 = vmul.f32 %v96_v24, %v96_v24  ;;  %v476_v44 = vadd.f32 %v797_v38, %v347_v29 }
  0x46   :  { %v477_v45 = vadd.f32 %v797_v38, %v348_v30  ;;  %v478_v46 = vadd.f32 %v797_v38, %v349_v31  ;;  %v479_v47 = vadd.f32 %v797_v38, %v350_v32  ;;  %v352_v50 = vmul.f32 %v793_v33, %v223_v39 }
  0x47   :  { %603 = vst [vmem:[#allocation7 + $0x190] sm:$0xff] %v475_v36  ;;  %v480_v49 = vadd.f32 %v797_v38, %v351_v37  ;;  %v353_v51 = vmul.f32 %v793_v33, %v224_v40  ;;  %v225_v52 = vmul.f32 %v97_v34, %v97_v34  ;;  %604 = vst [vmem:[#allocation7 + $0x198] sm:$0xff] %v476_v44  ;;  %v113_v36 = vld [vmem:[#allocation6 + $0x250] sm:$0xff]  ;;  %v114_v37 = vld [vmem:[#allocation6 + $0x258] sm:$0xff] }
  0x48   :  { %605 = vst [vmem:[#allocation7 + $0x1a0] sm:$0xff] %v477_v45  ;;  %606 = vst [vmem:[#allocation7 + $0x1a8] sm:$0xff] %v478_v46  ;;  %v226_v53 = vmul.f32 %v98_v35, %v98_v35  ;;  %v227_v54 = vmul.f32 %v99_v41, %v99_v41  ;;  %v228_v55 = vmul.f32 %v100_v42, %v100_v42  ;;  %v116_v44 = vld [vmem:[#allocation6 + $0x268] sm:$0xff]  ;;  %v117_v45 = vld [vmem:[#allocation6 + $0x270] sm:$0xff] }
  0x49   :  { %607 = vst [vmem:[#allocation7 + $0x1b0] sm:$0xff] %v479_v47  ;;  %v229_v56 = vmul.f32 %v101_v43, %v101_v43  ;;  %608 = vst [vmem:[#allocation7 + $0x1b8] sm:$0xff] %v480_v49  ;;  %v481_v59 = vadd.f32 %v797_v38, %v352_v50  ;;  %v482_v60 = vadd.f32 %v797_v38, %v353_v51  ;;  %v115_v43 = vld [vmem:[#allocation6 + $0x260] sm:$0xff]  ;;  %v118_v50 = vld [vmem:[#allocation6 + $0x278] sm:$0xff] }
  0x4a   :  { %v354_v61 = vmul.f32 %v793_v33, %v225_v52  ;;  %v230_v62 = vmul.f32 %v102_v48, %v102_v48  ;;  %v355_v63 = vmul.f32 %v793_v33, %v226_v53  ;;  %v356_v0 = vmul.f32 %v793_v33, %v227_v54 }
  0x4b   :  { %v357_v1 = vmul.f32 %v793_v33, %v228_v55  ;;  %v358_v2 = vmul.f32 %v793_v33, %v229_v56  ;;  %609 = vst [vmem:[#allocation7 + $0x1c0] sm:$0xff] %v481_v59  ;;  %610 = vst [vmem:[#allocation7 + $0x1c8] sm:$0xff] %v482_v60  ;;  %v231_v7 = vmul.f32 %v103_v57, %v103_v57  ;;  %v119_v59 = vld [vmem:[#allocation6 + $0x280] sm:$0xff]  ;;  %v120_v60 = vld [vmem:[#allocation6 + $0x288] sm:$0xff] }
  0x4c   :  { %v483_v5 = vadd.f32 %v797_v38, %v354_v61  ;;  %v359_v6 = vmul.f32 %v793_v33, %v230_v62  ;;  %v232_v8 = vmul.f32 %v104_v58, %v104_v58  ;;  %v484_v12 = vadd.f32 %v797_v38, %v355_v63 }
  0x4d   :  { %v485_v13 = vadd.f32 %v797_v38, %v356_v0  ;;  %v486_v14 = vadd.f32 %v797_v38, %v357_v1  ;;  %v487_v15 = vadd.f32 %v797_v38, %v358_v2  ;;  %v360_v18 = vmul.f32 %v793_v33, %v231_v7 }
  0x4e   :  { %611 = vst [vmem:[#allocation7 + $0x1d0] sm:$0xff] %v483_v5  ;;  %v488_v17 = vadd.f32 %v797_v38, %v359_v6  ;;  %v361_v19 = vmul.f32 %v793_v33, %v232_v8  ;;  %v233_v20 = vmul.f32 %v105_v3, %v105_v3  ;;  %612 = vst [vmem:[#allocation7 + $0x1d8] sm:$0xff] %v484_v12  ;;  %v121_v5 = vld [vmem:[#allocation6 + $0x290] sm:$0xff]  ;;  %v122_v6 = vld [vmem:[#allocation6 + $0x298] sm:$0xff] }
  0x4f   :  { %613 = vst [vmem:[#allocation7 + $0x1e0] sm:$0xff] %v485_v13  ;;  %614 = vst [vmem:[#allocation7 + $0x1e8] sm:$0xff] %v486_v14  ;;  %v234_v21 = vmul.f32 %v106_v4, %v106_v4  ;;  %v235_v22 = vmul.f32 %v107_v9, %v107_v9  ;;  %v236_v23 = vmul.f32 %v108_v10, %v108_v10  ;;  %v124_v12 = vld [vmem:[#allocation6 + $0x2a8] sm:$0xff]  ;;  %v125_v13 = vld [vmem:[#allocation6 + $0x2b0] sm:$0xff] }
  0x50   :  { %615 = vst [vmem:[#allocation7 + $0x1f0] sm:$0xff] %v487_v15  ;;  %v237_v24 = vmul.f32 %v109_v11, %v109_v11  ;;  %616 = vst [vmem:[#allocation7 + $0x1f8] sm:$0xff] %v488_v17  ;;  %v489_v27 = vadd.f32 %v797_v38, %v360_v18  ;;  %v490_v28 = vadd.f32 %v797_v38, %v361_v19  ;;  %v123_v11 = vld [vmem:[#allocation6 + $0x2a0] sm:$0xff]  ;;  %v126_v18 = vld [vmem:[#allocation6 + $0x2b8] sm:$0xff] }
  0x51   :  { %v362_v29 = vmul.f32 %v793_v33, %v233_v20  ;;  %v238_v30 = vmul.f32 %v110_v16, %v110_v16  ;;  %v363_v31 = vmul.f32 %v793_v33, %v234_v21  ;;  %v364_v32 = vmul.f32 %v793_v33, %v235_v22 }
  0x52   :  { %v365_v34 = vmul.f32 %v793_v33, %v236_v23  ;;  %v366_v35 = vmul.f32 %v793_v33, %v237_v24  ;;  %617 = vst [vmem:[#allocation7 + $0x200] sm:$0xff] %v489_v27  ;;  %618 = vst [vmem:[#allocation7 + $0x208] sm:$0xff] %v490_v28  ;;  %v239_v41 = vmul.f32 %v111_v25, %v111_v25  ;;  %v127_v27 = vld [vmem:[#allocation6 + $0x2c0] sm:$0xff]  ;;  %v128_v28 = vld [vmem:[#allocation6 + $0x2c8] sm:$0xff] }
  0x53   :  { %v491_v39 = vadd.f32 %v797_v38, %v362_v29  ;;  %v367_v40 = vmul.f32 %v793_v33, %v238_v30  ;;  %v240_v42 = vmul.f32 %v112_v26, %v112_v26  ;;  %v492_v46 = vadd.f32 %v797_v38, %v363_v31 }
  0x54   :  { %v493_v47 = vadd.f32 %v797_v38, %v364_v32  ;;  %v494_v48 = vadd.f32 %v797_v38, %v365_v34  ;;  %v495_v49 = vadd.f32 %v797_v38, %v366_v35  ;;  %v368_v52 = vmul.f32 %v793_v33, %v239_v41 }
  0x55   :  { %619 = vst [vmem:[#allocation7 + $0x210] sm:$0xff] %v491_v39  ;;  %v496_v51 = vadd.f32 %v797_v38, %v367_v40  ;;  %v369_v53 = vmul.f32 %v793_v33, %v240_v42  ;;  %v241_v54 = vmul.f32 %v113_v36, %v113_v36  ;;  %620 = vst [vmem:[#allocation7 + $0x218] sm:$0xff] %v492_v46  ;;  %v129_v39 = vld [vmem:[#allocation6 + $0x2d0] sm:$0xff]  ;;  %v130_v40 = vld [vmem:[#allocation6 + $0x2d8] sm:$0xff] }
  0x56   :  { %621 = vst [vmem:[#allocation7 + $0x220] sm:$0xff] %v493_v47  ;;  %622 = vst [vmem:[#allocation7 + $0x228] sm:$0xff] %v494_v48  ;;  %v242_v55 = vmul.f32 %v114_v37, %v114_v37  ;;  %v243_v56 = vmul.f32 %v115_v43, %v115_v43  ;;  %v244_v57 = vmul.f32 %v116_v44, %v116_v44  ;;  %v132_v46 = vld [vmem:[#allocation6 + $0x2e8] sm:$0xff]  ;;  %v133_v47 = vld [vmem:[#allocation6 + $0x2f0] sm:$0xff] }
  0x57   :  { %623 = vst [vmem:[#allocation7 + $0x230] sm:$0xff] %v495_v49  ;;  %v245_v58 = vmul.f32 %v117_v45, %v117_v45  ;;  %624 = vst [vmem:[#allocation7 + $0x238] sm:$0xff] %v496_v51  ;;  %v497_v61 = vadd.f32 %v797_v38, %v368_v52  ;;  %v498_v62 = vadd.f32 %v797_v38, %v369_v53  ;;  %v131_v45 = vld [vmem:[#allocation6 + $0x2e0] sm:$0xff]  ;;  %v134_v52 = vld [vmem:[#allocation6 + $0x2f8] sm:$0xff] }
  0x58   :  { %v370_v63 = vmul.f32 %v793_v33, %v241_v54  ;;  %v246_v0 = vmul.f32 %v118_v50, %v118_v50  ;;  %v371_v1 = vmul.f32 %v793_v33, %v242_v55  ;;  %v372_v2 = vmul.f32 %v793_v33, %v243_v56 }
  0x59   :  { %v373_v3 = vmul.f32 %v793_v33, %v244_v57  ;;  %v374_v4 = vmul.f32 %v793_v33, %v245_v58  ;;  %625 = vst [vmem:[#allocation7 + $0x240] sm:$0xff] %v497_v61  ;;  %626 = vst [vmem:[#allocation7 + $0x248] sm:$0xff] %v498_v62  ;;  %v247_v9 = vmul.f32 %v119_v59, %v119_v59  ;;  %v135_v61 = vld [vmem:[#allocation6 + $0x300] sm:$0xff]  ;;  %v136_v62 = vld [vmem:[#allocation6 + $0x308] sm:$0xff] }
  0x5a   :  { %v499_v7 = vadd.f32 %v797_v38, %v370_v63  ;;  %v375_v8 = vmul.f32 %v793_v33, %v246_v0  ;;  %v248_v10 = vmul.f32 %v120_v60, %v120_v60  ;;  %v500_v14 = vadd.f32 %v797_v38, %v371_v1 }
  0x5b   :  { %v501_v15 = vadd.f32 %v797_v38, %v372_v2  ;;  %v502_v16 = vadd.f32 %v797_v38, %v373_v3  ;;  %v503_v17 = vadd.f32 %v797_v38, %v374_v4  ;;  %v376_v20 = vmul.f32 %v793_v33, %v247_v9 }
  0x5c   :  { %627 = vst [vmem:[#allocation7 + $0x250] sm:$0xff] %v499_v7  ;;  %v504_v19 = vadd.f32 %v797_v38, %v375_v8  ;;  %v377_v21 = vmul.f32 %v793_v33, %v248_v10  ;;  %v249_v22 = vmul.f32 %v121_v5, %v121_v5  ;;  %628 = vst [vmem:[#allocation7 + $0x258] sm:$0xff] %v500_v14  ;;  %v137_v7 = vld [vmem:[#allocation6 + $0x310] sm:$0xff]  ;;  %v138_v8 = vld [vmem:[#allocation6 + $0x318] sm:$0xff] }
  0x5d   :  { %629 = vst [vmem:[#allocation7 + $0x260] sm:$0xff] %v501_v15  ;;  %630 = vst [vmem:[#allocation7 + $0x268] sm:$0xff] %v502_v16  ;;  %v250_v23 = vmul.f32 %v122_v6, %v122_v6  ;;  %v251_v24 = vmul.f32 %v123_v11, %v123_v11  ;;  %v252_v25 = vmul.f32 %v124_v12, %v124_v12  ;;  %v140_v14 = vld [vmem:[#allocation6 + $0x328] sm:$0xff]  ;;  %v141_v15 = vld [vmem:[#allocation6 + $0x330] sm:$0xff] }
  0x5e   :  { %631 = vst [vmem:[#allocation7 + $0x270] sm:$0xff] %v503_v17  ;;  %v253_v26 = vmul.f32 %v125_v13, %v125_v13  ;;  %632 = vst [vmem:[#allocation7 + $0x278] sm:$0xff] %v504_v19  ;;  %v505_v29 = vadd.f32 %v797_v38, %v376_v20  ;;  %v506_v30 = vadd.f32 %v797_v38, %v377_v21  ;;  %v139_v13 = vld [vmem:[#allocation6 + $0x320] sm:$0xff]  ;;  %v142_v20 = vld [vmem:[#allocation6 + $0x338] sm:$0xff] }
  0x5f   :  { %v378_v31 = vmul.f32 %v793_v33, %v249_v22  ;;  %v254_v32 = vmul.f32 %v126_v18, %v126_v18  ;;  %v379_v34 = vmul.f32 %v793_v33, %v250_v23  ;;  %v380_v35 = vmul.f32 %v793_v33, %v251_v24 }
  0x60   :  { %v381_v36 = vmul.f32 %v793_v33, %v252_v25  ;;  %v382_v37 = vmul.f32 %v793_v33, %v253_v26  ;;  %633 = vst [vmem:[#allocation7 + $0x280] sm:$0xff] %v505_v29  ;;  %634 = vst [vmem:[#allocation7 + $0x288] sm:$0xff] %v506_v30  ;;  %v255_v43 = vmul.f32 %v127_v27, %v127_v27  ;;  %v143_v29 = vld [vmem:[#allocation6 + $0x340] sm:$0xff]  ;;  %v144_v30 = vld [vmem:[#allocation6 + $0x348] sm:$0xff] }
  0x61   :  { %v507_v41 = vadd.f32 %v797_v38, %v378_v31  ;;  %v383_v42 = vmul.f32 %v793_v33, %v254_v32  ;;  %v256_v44 = vmul.f32 %v128_v28, %v128_v28  ;;  %v508_v48 = vadd.f32 %v797_v38, %v379_v34 }
  0x62   :  { %v509_v49 = vadd.f32 %v797_v38, %v380_v35  ;;  %v510_v50 = vadd.f32 %v797_v38, %v381_v36  ;;  %v511_v51 = vadd.f32 %v797_v38, %v382_v37  ;;  %v384_v54 = vmul.f32 %v793_v33, %v255_v43 }
  0x63   :  { %635 = vst [vmem:[#allocation7 + $0x290] sm:$0xff] %v507_v41  ;;  %v512_v53 = vadd.f32 %v797_v38, %v383_v42  ;;  %v385_v55 = vmul.f32 %v793_v33, %v256_v44  ;;  %v257_v56 = vmul.f32 %v129_v39, %v129_v39  ;;  %636 = vst [vmem:[#allocation7 + $0x298] sm:$0xff] %v508_v48  ;;  %v145_v41 = vld [vmem:[#allocation6 + $0x350] sm:$0xff]  ;;  %v146_v42 = vld [vmem:[#allocation6 + $0x358] sm:$0xff] }
  0x64   :  { %637 = vst [vmem:[#allocation7 + $0x2a0] sm:$0xff] %v509_v49  ;;  %638 = vst [vmem:[#allocation7 + $0x2a8] sm:$0xff] %v510_v50  ;;  %v258_v57 = vmul.f32 %v130_v40, %v130_v40  ;;  %v259_v58 = vmul.f32 %v131_v45, %v131_v45  ;;  %v260_v59 = vmul.f32 %v132_v46, %v132_v46  ;;  %v148_v48 = vld [vmem:[#allocation6 + $0x368] sm:$0xff]  ;;  %v149_v49 = vld [vmem:[#allocation6 + $0x370] sm:$0xff] }
  0x65   :  { %639 = vst [vmem:[#allocation7 + $0x2b0] sm:$0xff] %v511_v51  ;;  %v261_v60 = vmul.f32 %v133_v47, %v133_v47  ;;  %640 = vst [vmem:[#allocation7 + $0x2b8] sm:$0xff] %v512_v53  ;;  %v513_v63 = vadd.f32 %v797_v38, %v384_v54  ;;  %v514_v0 = vadd.f32 %v797_v38, %v385_v55  ;;  %v147_v47 = vld [vmem:[#allocation6 + $0x360] sm:$0xff]  ;;  %v150_v54 = vld [vmem:[#allocation6 + $0x378] sm:$0xff] }
  0x66   :  { %v386_v1 = vmul.f32 %v793_v33, %v257_v56  ;;  %v262_v2 = vmul.f32 %v134_v52, %v134_v52  ;;  %v387_v3 = vmul.f32 %v793_v33, %v258_v57  ;;  %v388_v4 = vmul.f32 %v793_v33, %v259_v58 }
  0x67   :  { %v389_v5 = vmul.f32 %v793_v33, %v260_v59  ;;  %v390_v6 = vmul.f32 %v793_v33, %v261_v60  ;;  %641 = vst [vmem:[#allocation7 + $0x2c0] sm:$0xff] %v513_v63  ;;  %642 = vst [vmem:[#allocation7 + $0x2c8] sm:$0xff] %v514_v0  ;;  %v263_v11 = vmul.f32 %v135_v61, %v135_v61  ;;  %v151_v63 = vld [vmem:[#allocation6 + $0x380] sm:$0xff]  ;;  %v152_v0 = vld [vmem:[#allocation6 + $0x388] sm:$0xff] }
  0x68   :  { %v515_v9 = vadd.f32 %v797_v38, %v386_v1  ;;  %v391_v10 = vmul.f32 %v793_v33, %v262_v2  ;;  %v264_v12 = vmul.f32 %v136_v62, %v136_v62  ;;  %v516_v16 = vadd.f32 %v797_v38, %v387_v3 }
  0x69   :  { %v517_v17 = vadd.f32 %v797_v38, %v388_v4  ;;  %v518_v18 = vadd.f32 %v797_v38, %v389_v5  ;;  %v519_v19 = vadd.f32 %v797_v38, %v390_v6  ;;  %v392_v22 = vmul.f32 %v793_v33, %v263_v11 }
  0x6a   :  { %643 = vst [vmem:[#allocation7 + $0x2d0] sm:$0xff] %v515_v9  ;;  %v520_v21 = vadd.f32 %v797_v38, %v391_v10  ;;  %v393_v23 = vmul.f32 %v793_v33, %v264_v12  ;;  %v265_v24 = vmul.f32 %v137_v7, %v137_v7  ;;  %644 = vst [vmem:[#allocation7 + $0x2d8] sm:$0xff] %v516_v16  ;;  %v153_v9 = vld [vmem:[#allocation6 + $0x390] sm:$0xff]  ;;  %v154_v10 = vld [vmem:[#allocation6 + $0x398] sm:$0xff] }
  0x6b   :  { %645 = vst [vmem:[#allocation7 + $0x2e0] sm:$0xff] %v517_v17  ;;  %646 = vst [vmem:[#allocation7 + $0x2e8] sm:$0xff] %v518_v18  ;;  %v266_v25 = vmul.f32 %v138_v8, %v138_v8  ;;  %v267_v26 = vmul.f32 %v139_v13, %v139_v13  ;;  %v268_v27 = vmul.f32 %v140_v14, %v140_v14  ;;  %v156_v16 = vld [vmem:[#allocation6 + $0x3a8] sm:$0xff]  ;;  %v157_v17 = vld [vmem:[#allocation6 + $0x3b0] sm:$0xff] }
  0x6c   :  { %647 = vst [vmem:[#allocation7 + $0x2f0] sm:$0xff] %v519_v19  ;;  %v269_v28 = vmul.f32 %v141_v15, %v141_v15  ;;  %648 = vst [vmem:[#allocation7 + $0x2f8] sm:$0xff] %v520_v21  ;;  %v521_v31 = vadd.f32 %v797_v38, %v392_v22  ;;  %v522_v32 = vadd.f32 %v797_v38, %v393_v23  ;;  %v155_v15 = vld [vmem:[#allocation6 + $0x3a0] sm:$0xff]  ;;  %v158_v22 = vld [vmem:[#allocation6 + $0x3b8] sm:$0xff] }
  0x6d   :  { %v394_v34 = vmul.f32 %v793_v33, %v265_v24  ;;  %v270_v35 = vmul.f32 %v142_v20, %v142_v20  ;;  %v395_v36 = vmul.f32 %v793_v33, %v266_v25  ;;  %v396_v37 = vmul.f32 %v793_v33, %v267_v26 }
  0x6e   :  { %v397_v39 = vmul.f32 %v793_v33, %v268_v27  ;;  %v398_v40 = vmul.f32 %v793_v33, %v269_v28  ;;  %649 = vst [vmem:[#allocation7 + $0x300] sm:$0xff] %v521_v31  ;;  %650 = vst [vmem:[#allocation7 + $0x308] sm:$0xff] %v522_v32  ;;  %v271_v45 = vmul.f32 %v143_v29, %v143_v29  ;;  %v159_v31 = vld [vmem:[#allocation6 + $0x3c0] sm:$0xff]  ;;  %v160_v32 = vld [vmem:[#allocation6 + $0x3c8] sm:$0xff] }
  0x6f   :  { %v523_v43 = vadd.f32 %v797_v38, %v394_v34  ;;  %v399_v44 = vmul.f32 %v793_v33, %v270_v35  ;;  %v272_v46 = vmul.f32 %v144_v30, %v144_v30  ;;  %v524_v50 = vadd.f32 %v797_v38, %v395_v36 }
  0x70   :  { %v525_v51 = vadd.f32 %v797_v38, %v396_v37  ;;  %v526_v52 = vadd.f32 %v797_v38, %v397_v39  ;;  %v527_v53 = vadd.f32 %v797_v38, %v398_v40  ;;  %v400_v56 = vmul.f32 %v793_v33, %v271_v45 }
  0x71   :  { %651 = vst [vmem:[#allocation7 + $0x310] sm:$0xff] %v523_v43  ;;  %v528_v55 = vadd.f32 %v797_v38, %v399_v44  ;;  %v401_v57 = vmul.f32 %v793_v33, %v272_v46  ;;  %v273_v58 = vmul.f32 %v145_v41, %v145_v41  ;;  %652 = vst [vmem:[#allocation7 + $0x318] sm:$0xff] %v524_v50  ;;  %v161_v43 = vld [vmem:[#allocation6 + $0x3d0] sm:$0xff]  ;;  %v162_v44 = vld [vmem:[#allocation6 + $0x3d8] sm:$0xff] }
  0x72   :  { %653 = vst [vmem:[#allocation7 + $0x320] sm:$0xff] %v525_v51  ;;  %654 = vst [vmem:[#allocation7 + $0x328] sm:$0xff] %v526_v52  ;;  %v274_v59 = vmul.f32 %v146_v42, %v146_v42  ;;  %v275_v60 = vmul.f32 %v147_v47, %v147_v47  ;;  %v276_v61 = vmul.f32 %v148_v48, %v148_v48  ;;  %v164_v50 = vld [vmem:[#allocation6 + $0x3e8] sm:$0xff]  ;;  %v165_v51 = vld [vmem:[#allocation6 + $0x3f0] sm:$0xff] }
  0x73   :  { %655 = vst [vmem:[#allocation7 + $0x330] sm:$0xff] %v527_v53  ;;  %v277_v62 = vmul.f32 %v149_v49, %v149_v49  ;;  %656 = vst [vmem:[#allocation7 + $0x338] sm:$0xff] %v528_v55  ;;  %v529_v1 = vadd.f32 %v797_v38, %v400_v56  ;;  %v530_v2 = vadd.f32 %v797_v38, %v401_v57  ;;  %v163_v49 = vld [vmem:[#allocation6 + $0x3e0] sm:$0xff]  ;;  %v166_v56 = vld [vmem:[#allocation6 + $0x3f8] sm:$0xff] }
  0x74   :  { %v402_v3 = vmul.f32 %v793_v33, %v273_v58  ;;  %v278_v4 = vmul.f32 %v150_v54, %v150_v54  ;;  %v403_v5 = vmul.f32 %v793_v33, %v274_v59  ;;  %v404_v6 = vmul.f32 %v793_v33, %v275_v60 }
  0x75   :  { %v405_v7 = vmul.f32 %v793_v33, %v276_v61  ;;  %v406_v8 = vmul.f32 %v793_v33, %v277_v62  ;;  %657 = vst [vmem:[#allocation7 + $0x340] sm:$0xff] %v529_v1  ;;  %658 = vst [vmem:[#allocation7 + $0x348] sm:$0xff] %v530_v2  ;;  %v279_v13 = vmul.f32 %v151_v63, %v151_v63 }
  0x76   :  { %v531_v11 = vadd.f32 %v797_v38, %v402_v3  ;;  %v407_v12 = vmul.f32 %v793_v33, %v278_v4  ;;  %v280_v14 = vmul.f32 %v152_v0, %v152_v0  ;;  %v532_v18 = vadd.f32 %v797_v38, %v403_v5 }
  0x77   :  { %v533_v19 = vadd.f32 %v797_v38, %v404_v6  ;;  %v534_v20 = vadd.f32 %v797_v38, %v405_v7  ;;  %v535_v21 = vadd.f32 %v797_v38, %v406_v8  ;;  %v408_v24 = vmul.f32 %v793_v33, %v279_v13 }
  0x78   :  { %659 = vst [vmem:[#allocation7 + $0x350] sm:$0xff] %v531_v11  ;;  %v536_v23 = vadd.f32 %v797_v38, %v407_v12  ;;  %v409_v25 = vmul.f32 %v793_v33, %v280_v14  ;;  %v281_v26 = vmul.f32 %v153_v9, %v153_v9  ;;  %660 = vst [vmem:[#allocation7 + $0x358] sm:$0xff] %v532_v18 }
  0x79   :  { %661 = vst [vmem:[#allocation7 + $0x360] sm:$0xff] %v533_v19  ;;  %662 = vst [vmem:[#allocation7 + $0x368] sm:$0xff] %v534_v20  ;;  %v282_v27 = vmul.f32 %v154_v10, %v154_v10  ;;  %v283_v28 = vmul.f32 %v155_v15, %v155_v15  ;;  %v284_v29 = vmul.f32 %v156_v16, %v156_v16 }
  0x7a   :  { %663 = vst [vmem:[#allocation7 + $0x370] sm:$0xff] %v535_v21  ;;  %v285_v30 = vmul.f32 %v157_v17, %v157_v17  ;;  %664 = vst [vmem:[#allocation7 + $0x378] sm:$0xff] %v536_v23  ;;  %v537_v34 = vadd.f32 %v797_v38, %v408_v24  ;;  %v538_v35 = vadd.f32 %v797_v38, %v409_v25 }
  0x7b   :  { %v410_v36 = vmul.f32 %v793_v33, %v281_v26  ;;  %v286_v37 = vmul.f32 %v158_v22, %v158_v22  ;;  %v411_v39 = vmul.f32 %v793_v33, %v282_v27  ;;  %v412_v40 = vmul.f32 %v793_v33, %v283_v28 }
  0x7c   :  { %v413_v41 = vmul.f32 %v793_v33, %v284_v29  ;;  %v414_v42 = vmul.f32 %v793_v33, %v285_v30  ;;  %665 = vst [vmem:[#allocation7 + $0x380] sm:$0xff] %v537_v34  ;;  %666 = vst [vmem:[#allocation7 + $0x388] sm:$0xff] %v538_v35  ;;  %v287_v47 = vmul.f32 %v159_v31, %v159_v31 }
  0x7d   :  { %v539_v45 = vadd.f32 %v797_v38, %v410_v36  ;;  %v415_v46 = vmul.f32 %v793_v33, %v286_v37  ;;  %v288_v48 = vmul.f32 %v160_v32, %v160_v32  ;;  %v540_v52 = vadd.f32 %v797_v38, %v411_v39 }
  0x7e   :  { %v541_v53 = vadd.f32 %v797_v38, %v412_v40  ;;  %v542_v54 = vadd.f32 %v797_v38, %v413_v41  ;;  %v543_v55 = vadd.f32 %v797_v38, %v414_v42  ;;  %v416_v58 = vmul.f32 %v793_v33, %v287_v47 }
  0x7f   :  { %667 = vst [vmem:[#allocation7 + $0x390] sm:$0xff] %v539_v45  ;;  %v544_v57 = vadd.f32 %v797_v38, %v415_v46  ;;  %v417_v59 = vmul.f32 %v793_v33, %v288_v48  ;;  %v289_v60 = vmul.f32 %v161_v43, %v161_v43  ;;  %668 = vst [vmem:[#allocation7 + $0x398] sm:$0xff] %v540_v52 }
  0x80   :  { %669 = vst [vmem:[#allocation7 + $0x3a0] sm:$0xff] %v541_v53  ;;  %670 = vst [vmem:[#allocation7 + $0x3a8] sm:$0xff] %v542_v54  ;;  %v290_v61 = vmul.f32 %v162_v44, %v162_v44  ;;  %v291_v62 = vmul.f32 %v163_v49, %v163_v49  ;;  %v292_v63 = vmul.f32 %v164_v50, %v164_v50 }
  0x81   :  { %671 = vst [vmem:[#allocation7 + $0x3b0] sm:$0xff] %v543_v55  ;;  %v293_v0 = vmul.f32 %v165_v51, %v165_v51  ;;  %672 = vst [vmem:[#allocation7 + $0x3b8] sm:$0xff] %v544_v57  ;;  %v545_v1 = vadd.f32 %v797_v38, %v416_v58  ;;  %v546_v2 = vadd.f32 %v797_v38, %v417_v59 }
  0x82   :  { %v418_v3 = vmul.f32 %v793_v33, %v289_v60  ;;  %v294_v4 = vmul.f32 %v166_v56, %v166_v56  ;;  %v419_v5 = vmul.f32 %v793_v33, %v290_v61  ;;  %v420_v6 = vmul.f32 %v793_v33, %v291_v62 }
  0x83   :  { %v421_v7 = vmul.f32 %v793_v33, %v292_v63  ;;  %v422_v8 = vmul.f32 %v793_v33, %v293_v0  ;;  %673 = vst [vmem:[#allocation7 + $0x3c0] sm:$0xff] %v545_v1  ;;  %674 = vst [vmem:[#allocation7 + $0x3c8] sm:$0xff] %v546_v2 }
  0x84   :  { %v547_v9 = vadd.f32 %v797_v38, %v418_v3  ;;  %v423_v10 = vmul.f32 %v793_v33, %v294_v4  ;;  %v548_v11 = vadd.f32 %v797_v38, %v419_v5  ;;  %v549_v12 = vadd.f32 %v797_v38, %v420_v6 }
  0x85   :  { %v550_v13 = vadd.f32 %v797_v38, %v421_v7  ;;  %v551_v14 = vadd.f32 %v797_v38, %v422_v8 }
  0x86   :  { %675 = vst [vmem:[#allocation7 + $0x3d0] sm:$0xff] %v547_v9  ;;  %v552_v15 = vadd.f32 %v797_v38, %v423_v10  ;;  %676 = vst [vmem:[#allocation7 + $0x3d8] sm:$0xff] %v548_v11 }
  0x87   :  { %677 = vst [vmem:[#allocation7 + $0x3e0] sm:$0xff] %v549_v12  ;;  %678 = vst [vmem:[#allocation7 + $0x3e8] sm:$0xff] %v550_v13 }
  0x88   :  { %679 = vst [vmem:[#allocation7 + $0x3f0] sm:$0xff] %v551_v14  ;;  %680 = vst [vmem:[#allocation7 + $0x3f8] sm:$0xff] %v552_v15 }
  0x89   :  { %744 = shalt.err (!%p741_p9)
}
  0x8a   :  { %692 = dma.vmem_to_hbm [thread:$0]  %s687_s20, 16384, %s1062_s2, [#allocation4], %s761_s15, %s761_s15, %s762_s16  }
  0x8b   :  { %757 = dma.done.wait [#allocation4], 16384  }
  0x8c   :  { %758 = vsyncadd [#allocation4], 4294950912 }
  0x8d   :  { %696 = vsyncpa [#allocation3], 1 }
  0x8e   :  { %697 = vsyncpa [#allocation4], 1 }
  0x8f   :  { %698 = vsyncpa [#allocation5], 1 }

</bundles_post_ra>
